<compile_context>
chip_gen: v7x
topology: tpu7x:2x2x1
jax: 0.10.0
libtpu: 0.0.40
codegen_flags: <defaults>
</compile_context>

<pallas_src>
import jax
import jax.numpy as jnp
from jax.experimental import pallas as pl
from jax.experimental.pallas import tpu as pltpu


# ----------------------------------------------------------------------------
# helpers
# ----------------------------------------------------------------------------
def _round_up(x, m):
    return (x + m - 1) // m * m


def _vmem_limit_bytes():
    """Generation-aware VMEM budget: ~100 MiB on v5e/v6e (128 MiB physical),
    capacity-derived (~51 MiB) on v7x (64 MiB physical)."""
    try:
        cap = int(pltpu.get_tpu_info().vmem_capacity_bytes)
    except Exception:
        cap = 64 * 1024 * 1024          # conservative fallback (v7x per-core)
    return int(min(100 * 1024 * 1024, cap * 4 // 5))


def _pick_score_dtype():
    """bf16 tanh on v6e/v7x (EUP/VPU support bf16 there); f32 on v5e/older."""
    try:
        kind = jax.devices()[0].device_kind.lower()
    except Exception:
        kind = ""
    if "v6" in kind or "v7" in kind:
        return jnp.bfloat16
    return jnp.float32


def _derive_block_k(E, D2, Lq_p, Dv_p, in_item, out_item, sc_item,
                    vmem_limit, return_atten):
    """Largest key-tile that keeps live state inside the VMEM budget."""
    # Fixed per-step cost (independent of block_k), double-buffered streams.
    fixed = 2 * E * Lq_p * sc_item            # qp_t block
    fixed += 2 * Lq_p * Dv_p * in_item        # value block
    fixed += 2 * E * D2 * in_item             # Wc2
    fixed += 4 * 1024 * 1024                  # compiler scratch / misc slack
    # Per-key-row cost.
    per_row = 2 * D2 * in_item                # key tile row (double-buffered)
    per_row += E * 4                          # kp row (f32, live)
    per_row += 4 * Lq_p * 4                   # score acc + softmax temps (f32)
    per_row += Lq_p * sc_item                 # streamed tanh temp
    per_row += 2 * Dv_p * out_item            # ctx output rows
    if return_atten:
        per_row += 2 * Lq_p * out_item        # attention output rows
    budget = vmem_limit - fixed
    bk = max(8, budget // per_row)
    bk = min(int(bk), 1024)
    return max(8, bk // 8 * 8)


# ----------------------------------------------------------------------------
# kernel
# ----------------------------------------------------------------------------
def _make_kernel(E, lq_valid, lq_padded, score_dtype, return_atten):
    def kernel(vc_ref, wc2_ref, qp_ref, k_ref, v_ref, *out_refs):
        ctx_ref = out_refs[0]
        wc2 = wc2_ref[...]                      # (E, 2E)  native dtype -> MXU
        qp_t = qp_ref[0]                        # (E, Lq_p) already in score dtype
        k = k_ref[0]                            # (TK, 2E)
        v = v_ref[0]                            # (Lq_p, Dv_p)
        tk = k.shape[0]

        # Key projection on the MXU: contract last dims of both operands
        # (no materialized transposes), f32 accumulation.
        kp = jax.lax.dot_general(k, wc2, (((1,), (1,)), ((), ())),
                                 preferred_element_type=jnp.float32)
        kp = kp.astype(score_dtype)             # (TK, E)

        # Streamed additive score: s[j, i] = sum_e vc[e] * tanh(kp[j, e] + qp_t[e, i]).
        # Live state is only the (TK, Lq_p) accumulator + one tanh temp; the
        # (TK, E, Lq) intermediate of the previous version is never built, and
        # kp is consumed column-wise (lane-broadcast) with no relayout.
        s = jnp.zeros((tk, lq_padded), jnp.float32)
        for e in range(E):                      # E is small & static -> unrolled
            t = jnp.tanh(kp[:, e:e + 1] + qp_t[e:e + 1, :])      # (TK, Lq_p)
            s = s + vc_ref[e] * t.astype(jnp.float32)            # scalar from SMEM

        # Mask padded query columns; softmax over the true Lq (torch dim=2), f32.
        if lq_padded > lq_valid:
            col = jax.lax.broadcasted_iota(jnp.int32, (tk, lq_padded), 1)
            s = jnp.where(col < lq_valid, s, -1e30)
        m = jnp.max(s, axis=-1, keepdims=True)
        ex = jnp.exp(s - m)
        # Exact divide: attention probabilities are externally visible.
        p = ex / jnp.sum(ex, axis=-1, keepdims=True)

        # dropout(p) == identity in eval / p=0.  context = atten @ value (MXU).
        ctx = jnp.dot(p.astype(v.dtype), v, preferred_element_type=jnp.float32)
        ctx_ref[0] = ctx.astype(ctx_ref.dtype)
        if return_atten:
            out_refs[1][0] = p.astype(out_refs[1].dtype)

    return kernel


# ----------------------------------------------------------------------------
# wrapper
# ----------------------------------------------------------------------------
def concat_atten(query, key, value, wc1, wc2, vc, *, block_k=None,
                 return_atten=True, score_dtype=None):
    """query: [B, Lq, 2E], key: [B, Lk, 2E], value: [B, Lq, Dv],
    wc1/wc2: [E, 2E] (nn.Linear weight layout), vc: [1, E] (or [E])."""
    B, Lq, D2 = query.shape
    _, Lk, _ = key.shape
    _, Lv, Dv = value.shape
    assert Lv == Lq, "value sequence length must match query length (torch.bmm)"
    E = wc1.shape[0]

    if score_dtype is None:
        score_dtype = _pick_score_dtype()
    score_dtype = jnp.dtype(score_dtype)
    out_dtype = query.dtype
    in_item = jnp.dtype(query.dtype).itemsize
    out_item = jnp.dtype(out_dtype).itemsize
    sc_item = score_dtype.itemsize

    # Lane-dense padding (multiples of 128) for the score/softmax tiles and
    # for both output stores.
    LANE = 128
    Lq_p = _round_up(Lq, LANE)
    Dv_p = _round_up(Dv, LANE)

    # Hoisted query projection: one large MXU matmul instead of Lk/block_k
    # small dots per batch; produced directly in (E, Lq) orientation so qp
    # rows are stride-0 sublane broadcasts inside the kernel.
    qp_t = jnp.einsum("bqf,ef->beq", query, wc1,
                      preferred_element_type=jnp.float32).astype(score_dtype)
    qp_t = jnp.pad(qp_t, ((0, 0), (0, 0), (0, Lq_p - Lq)))
    value_p = jnp.pad(value, ((0, 0), (0, Lq_p - Lq), (0, Dv_p - Dv)))

    vmem_limit = _vmem_limit_bytes()
    if block_k is None:
        block_k = _derive_block_k(E, D2, Lq_p, Dv_p, in_item, out_item, sc_item,
                                  vmem_limit, return_atten)
    block_k = max(8, int(block_k) // 8 * 8)
    lk8 = _round_up(Lk, 8)
    block_k = min(block_k, lk8)
    if B == 1 and block_k >= lk8 and lk8 >= 16:
        # v7x has 2 TensorCores: with a single batch keep >= 2 key tiles.
        block_k = max(8, (lk8 // 2) // 8 * 8)
    Lk_p = _round_up(Lk, block_k)
    # Zero-padded key rows -> finite scores (softmax is per-row), sliced off below.
    key_p = jnp.pad(key, ((0, 0), (0, Lk_p - Lk), (0, 0)))

    vc1d = jnp.asarray(vc).reshape(-1).astype(jnp.float32)   # (E,) scalars -> SMEM

    grid = (B, Lk_p // block_k)
    n_kt = grid[1]

    # Advisory cost estimate: this call is transcendental-bound (tanh).
    flops = (2 * B * Lk_p * D2 * E              # in-kernel key projection
             + 3 * B * Lk_p * Lq_p * E          # streamed add/mul/acc scores
             + 2 * B * Lk_p * Lq_p * Dv_p       # context matmul
             + 5 * B * Lk_p * Lq_p)             # softmax
    transcendentals = B * Lk_p * Lq_p * (E + 1)
    bytes_accessed = (qp_t.size * sc_item * n_kt
                      + value_p.size * in_item * n_kt
                      + key_p.size * in_item
                      + wc2.size * in_item * B * n_kt
                      + B * Lk_p * Dv_p * out_item
                      + (B * Lk_p * Lq_p * out_item if return_atten else 0))

    in_specs = [
        pl.BlockSpec(memory_space=pltpu.MemorySpace.SMEM),            # vc scalars
        pl.BlockSpec((E, D2), lambda b, kt: (0, 0)),                  # Wc2
        pl.BlockSpec((1, E, Lq_p), lambda b, kt: (b, 0, 0)),          # qp_t (per batch)
        pl.BlockSpec((1, block_k, D2), lambda b, kt: (b, kt, 0)),     # key tile
        pl.BlockSpec((1, Lq_p, Dv_p), lambda b, kt: (b, 0, 0)),       # value (per batch)
    ]
    ctx_spec = pl.BlockSpec((1, block_k, Dv_p), lambda b, kt: (b, kt, 0))
    if return_atten:
        out_shape = (jax.ShapeDtypeStruct((B, Lk_p, Dv_p), out_dtype),
                     jax.ShapeDtypeStruct((B, Lk_p, Lq_p), out_dtype))
        out_specs = [ctx_spec,
                     pl.BlockSpec((1, block_k, Lq_p), lambda b, kt: (b, kt, 0))]
    else:
        out_shape = jax.ShapeDtypeStruct((B, Lk_p, Dv_p), out_dtype)
        out_specs = ctx_spec

    kernel = _make_kernel(E, Lq, Lq_p, score_dtype, return_atten)

    result = pl.pallas_call(
        kernel,
        out_shape=out_shape,
        grid_spec=pltpu.PrefetchScalarGridSpec(
            num_scalar_prefetch=0,
            grid=grid,
            in_specs=in_specs,
            out_specs=out_specs,
        ),
        compiler_params=pltpu.CompilerParams(
            dimension_semantics=("parallel", "parallel"),
            vmem_limit_bytes=vmem_limit,
        ),
        cost_estimate=pl.CostEstimate(
            flops=int(flops),
            transcendentals=int(transcendentals),
            bytes_accessed=int(bytes_accessed),
        ),
    )(vc1d, wc2, qp_t, key_p, value_p)

    if return_atten:
        ctx_p, attn_p = result
        return ctx_p[:, :Lk, :Dv], attn_p[:, :Lk, :Lq]
    return result[:, :Lk, :Dv]


# ----------------------------------------------------------------------------
# pure-JAX reference
# ----------------------------------------------------------------------------
def _reference(query, key, value, wc1, wc2, vc):
    qp = jnp.einsum("bqf,ef->bqe", query, wc1)
    kp = jnp.einsum("bkf,ef->bke", key, wc2)
    t = jnp.tanh(qp[:, None, :, :] + kp[:, :, None, :])          # [B, Lk, Lq, E]
    s = jnp.einsum("bkqe,e->bkq", t, jnp.asarray(vc).reshape(-1))
    p = jax.nn.softmax(s, axis=2)
    ctx = jnp.einsum("bkq,bqd->bkd", p, value)
    return ctx, p


if __name__ == "__main__":
    # Small shapes consistent with the module: inputs are 2*encode_size wide.
    encode_size = 16
    E = encode_size
    D2 = 2 * encode_size
    B, Lq, Lk, Dv = 2, 8, 8, 2 * encode_size

    rng = jax.random.PRNGKey(0)
    kq, kk, kv, kw1, kw2, kwv = jax.random.split(rng, 6)
    query = jax.random.normal(kq, (B, Lq, D2), dtype=jnp.float32)
    key = jax.random.normal(kk, (B, Lk, D2), dtype=jnp.float32)
    value = jax.random.normal(kv, (B, Lq, Dv), dtype=jnp.float32)
    wc1 = jax.random.normal(kw1, (E, D2), dtype=jnp.float32) * (D2 ** -0.5)
    wc2 = jax.random.normal(kw2, (E, D2), dtype=jnp.float32) * (E ** -0.5)
    vc = jax.random.normal(kwv, (1, E), dtype=jnp.float32) * (E ** -0.5)

    score_dtype = _pick_score_dtype()
    ctx, attn = concat_atten(query, key, value, wc1, wc2, vc,
                             score_dtype=score_dtype)
    jax.block_until_ready((ctx, attn))

    ctx_ref, attn_ref = _reference(query, key, value, wc1, wc2, vc)
    # bf16 tanh path (v6e/v7x) needs a looser tolerance; f32 path is tight.
    tol = 3e-2 if jnp.dtype(score_dtype) == jnp.dtype(jnp.bfloat16) else 2e-3
    assert jnp.allclose(attn, attn_ref, atol=tol, rtol=tol), "attention mismatch"
    assert jnp.allclose(ctx, ctx_ref, atol=tol, rtol=tol), "context mismatch"
    # Exact softmax divide: rows must sum to ~1.
    assert jnp.allclose(jnp.sum(attn, axis=-1), 1.0, atol=1e-5), "softmax not normalized"

    # Exercise the context-only fast path (skips the (B, Lk, Lq) attention writeback).
    ctx_only = concat_atten(query, key, value, wc1, wc2, vc,
                            score_dtype=score_dtype, return_atten=False)
    jax.block_until_ready(ctx_only)
    assert jnp.allclose(ctx_only, ctx_ref, atol=tol, rtol=tol), "ctx-only mismatch"

    print("KERNEL_OK")
</pallas_src>

<mosaic_0001>
module attributes {stable_mosaic.version = 11 : i64} {
  func.func @kernel(%arg0: i32, %arg1: i32, %arg2: memref<16xf32, #tpu.memory_space<smem>>, %arg3: memref<16x32xf32, #tpu.memory_space<vmem>>, %arg4: memref<1x16x128xf32, #tpu.memory_space<vmem>>, %arg5: memref<1x8x32xf32, #tpu.memory_space<vmem>>, %arg6: memref<1x128x128xf32, #tpu.memory_space<vmem>>, %arg7: memref<1x8x128xf32, #tpu.memory_space<vmem>>, %arg8: memref<1x8x128xf32, #tpu.memory_space<vmem>>) attributes {dimension_semantics = [#tpu.dimension_semantics<parallel>, #tpu.dimension_semantics<parallel>], iteration_bounds = array<i64: 2, 1>, scalar_prefetch = 0 : i64, scratch_operands = 0 : i64, tpu.core_type = #tpu.core_type<tc>, window_params = [{transform_indices = @transform_0, window_bounds = array<i64: 16>}, {pipeline_mode = #tpu.pipeline_mode<synchronous>, transform_indices = @transform_1, window_bounds = array<i64: 16, 32>}, {transform_indices = @transform_2, window_bounds = array<i64: 1, 16, 128>}, {transform_indices = @transform_3, window_bounds = array<i64: 1, 8, 32>}, {transform_indices = @transform_4, window_bounds = array<i64: 1, 128, 128>}, {transform_indices = @transform_5, window_bounds = array<i64: 1, 8, 128>}, {transform_indices = @transform_6, window_bounds = array<i64: 1, 8, 128>}]} {
    %c0 = arith.constant 0 : index
    %c0_0 = arith.constant 0 : index
    %0 = vector.load %arg3[%c0, %c0_0] : memref<16x32xf32, #tpu.memory_space<vmem>>, vector<16x32xf32>
    %c0_1 = arith.constant 0 : index
    %c0_2 = arith.constant 0 : index
    %c0_3 = arith.constant 0 : index
    %1 = vector.load %arg4[%c0_1, %c0_2, %c0_3] : memref<1x16x128xf32, #tpu.memory_space<vmem>>, vector<1x16x128xf32>
    %2 = vector.shape_cast %1 : vector<1x16x128xf32> to vector<16x128xf32>
    %c0_4 = arith.constant 0 : index
    %c0_5 = arith.constant 0 : index
    %c0_6 = arith.constant 0 : index
    %3 = vector.load %arg5[%c0_4, %c0_5, %c0_6] : memref<1x8x32xf32, #tpu.memory_space<vmem>>, vector<1x8x32xf32>
    %4 = vector.shape_cast %3 : vector<1x8x32xf32> to vector<8x32xf32>
    %c0_7 = arith.constant 0 : index
    %c0_8 = arith.constant 0 : index
    %c0_9 = arith.constant 0 : index
    %5 = vector.load %arg6[%c0_7, %c0_8, %c0_9] : memref<1x128x128xf32, #tpu.memory_space<vmem>>, vector<1x128x128xf32>
    %6 = vector.shape_cast %5 : vector<1x128x128xf32> to vector<128x128xf32>
    %cst = arith.constant dense<0.000000e+00> : vector<8x16xf32>
    %7 = tpu.matmul %4, %0, %cst {dimension_numbers = #tpu.dot_dimension_numbers<[1], [1], [0], [0], [0, 0, 1, 0], [], []>} : vector<8x32xf32>, vector<16x32xf32>, vector<8x16xf32> -> vector<8x16xf32>
    %cst_10 = arith.constant 0.000000e+00 : f32
    %8 = vector.broadcast %cst_10 : f32 to vector<8x128xf32>
    %9 = vector.extract_strided_slice %7 {offsets = [0, 0], sizes = [8, 1], strides = [1, 1]} : vector<8x16xf32> to vector<8x1xf32>
    %10 = vector.extract_strided_slice %2 {offsets = [0, 0], sizes = [1, 128], strides = [1, 1]} : vector<16x128xf32> to vector<1x128xf32>
    %11 = vector.broadcast %9 : vector<8x1xf32> to vector<8x128xf32>
    %12 = vector.broadcast %10 : vector<1x128xf32> to vector<8x128xf32>
    %13 = arith.addf %11, %12 : vector<8x128xf32>
    %14 = math.tanh %13 : vector<8x128xf32>
    %c0_11 = arith.constant 0 : index
    %15 = memref.load %arg2[%c0_11] : memref<16xf32, #tpu.memory_space<smem>>
    %16 = vector.broadcast %15 : f32 to vector<8x128xf32>
    %17 = arith.mulf %16, %14 : vector<8x128xf32>
    %18 = arith.addf %8, %17 : vector<8x128xf32>
    %19 = vector.extract_strided_slice %7 {offsets = [0, 1], sizes = [8, 1], strides = [1, 1]} : vector<8x16xf32> to vector<8x1xf32>
    %20 = vector.extract_strided_slice %2 {offsets = [1, 0], sizes = [1, 128], strides = [1, 1]} : vector<16x128xf32> to vector<1x128xf32>
    %21 = vector.broadcast %19 : vector<8x1xf32> to vector<8x128xf32>
    %22 = vector.broadcast %20 : vector<1x128xf32> to vector<8x128xf32>
    %23 = arith.addf %21, %22 : vector<8x128xf32>
    %24 = math.tanh %23 : vector<8x128xf32>
    %c1 = arith.constant 1 : index
    %25 = memref.load %arg2[%c1] : memref<16xf32, #tpu.memory_space<smem>>
    %26 = vector.broadcast %25 : f32 to vector<8x128xf32>
    %27 = arith.mulf %26, %24 : vector<8x128xf32>
    %28 = arith.addf %18, %27 : vector<8x128xf32>
    %29 = vector.extract_strided_slice %7 {offsets = [0, 2], sizes = [8, 1], strides = [1, 1]} : vector<8x16xf32> to vector<8x1xf32>
    %30 = vector.extract_strided_slice %2 {offsets = [2, 0], sizes = [1, 128], strides = [1, 1]} : vector<16x128xf32> to vector<1x128xf32>
    %31 = vector.broadcast %29 : vector<8x1xf32> to vector<8x128xf32>
    %32 = vector.broadcast %30 : vector<1x128xf32> to vector<8x128xf32>
    %33 = arith.addf %31, %32 : vector<8x128xf32>
    %34 = math.tanh %33 : vector<8x128xf32>
    %c2 = arith.constant 2 : index
    %35 = memref.load %arg2[%c2] : memref<16xf32, #tpu.memory_space<smem>>
    %36 = vector.broadcast %35 : f32 to vector<8x128xf32>
    %37 = arith.mulf %36, %34 : vector<8x128xf32>
    %38 = arith.addf %28, %37 : vector<8x128xf32>
    %39 = vector.extract_strided_slice %7 {offsets = [0, 3], sizes = [8, 1], strides = [1, 1]} : vector<8x16xf32> to vector<8x1xf32>
    %40 = vector.extract_strided_slice %2 {offsets = [3, 0], sizes = [1, 128], strides = [1, 1]} : vector<16x128xf32> to vector<1x128xf32>
    %41 = vector.broadcast %39 : vector<8x1xf32> to vector<8x128xf32>
    %42 = vector.broadcast %40 : vector<1x128xf32> to vector<8x128xf32>
    %43 = arith.addf %41, %42 : vector<8x128xf32>
    %44 = math.tanh %43 : vector<8x128xf32>
    %c3 = arith.constant 3 : index
    %45 = memref.load %arg2[%c3] : memref<16xf32, #tpu.memory_space<smem>>
    %46 = vector.broadcast %45 : f32 to vector<8x128xf32>
    %47 = arith.mulf %46, %44 : vector<8x128xf32>
    %48 = arith.addf %38, %47 : vector<8x128xf32>
    %49 = vector.extract_strided_slice %7 {offsets = [0, 4], sizes = [8, 1], strides = [1, 1]} : vector<8x16xf32> to vector<8x1xf32>
    %50 = vector.extract_strided_slice %2 {offsets = [4, 0], sizes = [1, 128], strides = [1, 1]} : vector<16x128xf32> to vector<1x128xf32>
    %51 = vector.broadcast %49 : vector<8x1xf32> to vector<8x128xf32>
    %52 = vector.broadcast %50 : vector<1x128xf32> to vector<8x128xf32>
    %53 = arith.addf %51, %52 : vector<8x128xf32>
    %54 = math.tanh %53 : vector<8x128xf32>
    %c4 = arith.constant 4 : index
    %55 = memref.load %arg2[%c4] : memref<16xf32, #tpu.memory_space<smem>>
    %56 = vector.broadcast %55 : f32 to vector<8x128xf32>
    %57 = arith.mulf %56, %54 : vector<8x128xf32>
    %58 = arith.addf %48, %57 : vector<8x128xf32>
    %59 = vector.extract_strided_slice %7 {offsets = [0, 5], sizes = [8, 1], strides = [1, 1]} : vector<8x16xf32> to vector<8x1xf32>
    %60 = vector.extract_strided_slice %2 {offsets = [5, 0], sizes = [1, 128], strides = [1, 1]} : vector<16x128xf32> to vector<1x128xf32>
    %61 = vector.broadcast %59 : vector<8x1xf32> to vector<8x128xf32>
    %62 = vector.broadcast %60 : vector<1x128xf32> to vector<8x128xf32>
    %63 = arith.addf %61, %62 : vector<8x128xf32>
    %64 = math.tanh %63 : vector<8x128xf32>
    %c5 = arith.constant 5 : index
    %65 = memref.load %arg2[%c5] : memref<16xf32, #tpu.memory_space<smem>>
    %66 = vector.broadcast %65 : f32 to vector<8x128xf32>
    %67 = arith.mulf %66, %64 : vector<8x128xf32>
    %68 = arith.addf %58, %67 : vector<8x128xf32>
    %69 = vector.extract_strided_slice %7 {offsets = [0, 6], sizes = [8, 1], strides = [1, 1]} : vector<8x16xf32> to vector<8x1xf32>
    %70 = vector.extract_strided_slice %2 {offsets = [6, 0], sizes = [1, 128], strides = [1, 1]} : vector<16x128xf32> to vector<1x128xf32>
    %71 = vector.broadcast %69 : vector<8x1xf32> to vector<8x128xf32>
    %72 = vector.broadcast %70 : vector<1x128xf32> to vector<8x128xf32>
    %73 = arith.addf %71, %72 : vector<8x128xf32>
    %74 = math.tanh %73 : vector<8x128xf32>
    %c6 = arith.constant 6 : index
    %75 = memref.load %arg2[%c6] : memref<16xf32, #tpu.memory_space<smem>>
    %76 = vector.broadcast %75 : f32 to vector<8x128xf32>
    %77 = arith.mulf %76, %74 : vector<8x128xf32>
    %78 = arith.addf %68, %77 : vector<8x128xf32>
    %79 = vector.extract_strided_slice %7 {offsets = [0, 7], sizes = [8, 1], strides = [1, 1]} : vector<8x16xf32> to vector<8x1xf32>
    %80 = vector.extract_strided_slice %2 {offsets = [7, 0], sizes = [1, 128], strides = [1, 1]} : vector<16x128xf32> to vector<1x128xf32>
    %81 = vector.broadcast %79 : vector<8x1xf32> to vector<8x128xf32>
    %82 = vector.broadcast %80 : vector<1x128xf32> to vector<8x128xf32>
    %83 = arith.addf %81, %82 : vector<8x128xf32>
    %84 = math.tanh %83 : vector<8x128xf32>
    %c7 = arith.constant 7 : index
    %85 = memref.load %arg2[%c7] : memref<16xf32, #tpu.memory_space<smem>>
    %86 = vector.broadcast %85 : f32 to vector<8x128xf32>
    %87 = arith.mulf %86, %84 : vector<8x128xf32>
    %88 = arith.addf %78, %87 : vector<8x128xf32>
    %89 = vector.extract_strided_slice %7 {offsets = [0, 8], sizes = [8, 1], strides = [1, 1]} : vector<8x16xf32> to vector<8x1xf32>
    %90 = vector.extract_strided_slice %2 {offsets = [8, 0], sizes = [1, 128], strides = [1, 1]} : vector<16x128xf32> to vector<1x128xf32>
    %91 = vector.broadcast %89 : vector<8x1xf32> to vector<8x128xf32>
    %92 = vector.broadcast %90 : vector<1x128xf32> to vector<8x128xf32>
    %93 = arith.addf %91, %92 : vector<8x128xf32>
    %94 = math.tanh %93 : vector<8x128xf32>
    %c8 = arith.constant 8 : index
    %95 = memref.load %arg2[%c8] : memref<16xf32, #tpu.memory_space<smem>>
    %96 = vector.broadcast %95 : f32 to vector<8x128xf32>
    %97 = arith.mulf %96, %94 : vector<8x128xf32>
    %98 = arith.addf %88, %97 : vector<8x128xf32>
    %99 = vector.extract_strided_slice %7 {offsets = [0, 9], sizes = [8, 1], strides = [1, 1]} : vector<8x16xf32> to vector<8x1xf32>
    %100 = vector.extract_strided_slice %2 {offsets = [9, 0], sizes = [1, 128], strides = [1, 1]} : vector<16x128xf32> to vector<1x128xf32>
    %101 = vector.broadcast %99 : vector<8x1xf32> to vector<8x128xf32>
    %102 = vector.broadcast %100 : vector<1x128xf32> to vector<8x128xf32>
    %103 = arith.addf %101, %102 : vector<8x128xf32>
    %104 = math.tanh %103 : vector<8x128xf32>
    %c9 = arith.constant 9 : index
    %105 = memref.load %arg2[%c9] : memref<16xf32, #tpu.memory_space<smem>>
    %106 = vector.broadcast %105 : f32 to vector<8x128xf32>
    %107 = arith.mulf %106, %104 : vector<8x128xf32>
    %108 = arith.addf %98, %107 : vector<8x128xf32>
    %109 = vector.extract_strided_slice %7 {offsets = [0, 10], sizes = [8, 1], strides = [1, 1]} : vector<8x16xf32> to vector<8x1xf32>
    %110 = vector.extract_strided_slice %2 {offsets = [10, 0], sizes = [1, 128], strides = [1, 1]} : vector<16x128xf32> to vector<1x128xf32>
    %111 = vector.broadcast %109 : vector<8x1xf32> to vector<8x128xf32>
    %112 = vector.broadcast %110 : vector<1x128xf32> to vector<8x128xf32>
    %113 = arith.addf %111, %112 : vector<8x128xf32>
    %114 = math.tanh %113 : vector<8x128xf32>
    %c10 = arith.constant 10 : index
    %115 = memref.load %arg2[%c10] : memref<16xf32, #tpu.memory_space<smem>>
    %116 = vector.broadcast %115 : f32 to vector<8x128xf32>
    %117 = arith.mulf %116, %114 : vector<8x128xf32>
    %118 = arith.addf %108, %117 : vector<8x128xf32>
    %119 = vector.extract_strided_slice %7 {offsets = [0, 11], sizes = [8, 1], strides = [1, 1]} : vector<8x16xf32> to vector<8x1xf32>
    %120 = vector.extract_strided_slice %2 {offsets = [11, 0], sizes = [1, 128], strides = [1, 1]} : vector<16x128xf32> to vector<1x128xf32>
    %121 = vector.broadcast %119 : vector<8x1xf32> to vector<8x128xf32>
    %122 = vector.broadcast %120 : vector<1x128xf32> to vector<8x128xf32>
    %123 = arith.addf %121, %122 : vector<8x128xf32>
    %124 = math.tanh %123 : vector<8x128xf32>
    %c11 = arith.constant 11 : index
    %125 = memref.load %arg2[%c11] : memref<16xf32, #tpu.memory_space<smem>>
    %126 = vector.broadcast %125 : f32 to vector<8x128xf32>
    %127 = arith.mulf %126, %124 : vector<8x128xf32>
    %128 = arith.addf %118, %127 : vector<8x128xf32>
    %129 = vector.extract_strided_slice %7 {offsets = [0, 12], sizes = [8, 1], strides = [1, 1]} : vector<8x16xf32> to vector<8x1xf32>
    %130 = vector.extract_strided_slice %2 {offsets = [12, 0], sizes = [1, 128], strides = [1, 1]} : vector<16x128xf32> to vector<1x128xf32>
    %131 = vector.broadcast %129 : vector<8x1xf32> to vector<8x128xf32>
    %132 = vector.broadcast %130 : vector<1x128xf32> to vector<8x128xf32>
    %133 = arith.addf %131, %132 : vector<8x128xf32>
    %134 = math.tanh %133 : vector<8x128xf32>
    %c12 = arith.constant 12 : index
    %135 = memref.load %arg2[%c12] : memref<16xf32, #tpu.memory_space<smem>>
    %136 = vector.broadcast %135 : f32 to vector<8x128xf32>
    %137 = arith.mulf %136, %134 : vector<8x128xf32>
    %138 = arith.addf %128, %137 : vector<8x128xf32>
    %139 = vector.extract_strided_slice %7 {offsets = [0, 13], sizes = [8, 1], strides = [1, 1]} : vector<8x16xf32> to vector<8x1xf32>
    %140 = vector.extract_strided_slice %2 {offsets = [13, 0], sizes = [1, 128], strides = [1, 1]} : vector<16x128xf32> to vector<1x128xf32>
    %141 = vector.broadcast %139 : vector<8x1xf32> to vector<8x128xf32>
    %142 = vector.broadcast %140 : vector<1x128xf32> to vector<8x128xf32>
    %143 = arith.addf %141, %142 : vector<8x128xf32>
    %144 = math.tanh %143 : vector<8x128xf32>
    %c13 = arith.constant 13 : index
    %145 = memref.load %arg2[%c13] : memref<16xf32, #tpu.memory_space<smem>>
    %146 = vector.broadcast %145 : f32 to vector<8x128xf32>
    %147 = arith.mulf %146, %144 : vector<8x128xf32>
    %148 = arith.addf %138, %147 : vector<8x128xf32>
    %149 = vector.extract_strided_slice %7 {offsets = [0, 14], sizes = [8, 1], strides = [1, 1]} : vector<8x16xf32> to vector<8x1xf32>
    %150 = vector.extract_strided_slice %2 {offsets = [14, 0], sizes = [1, 128], strides = [1, 1]} : vector<16x128xf32> to vector<1x128xf32>
    %151 = vector.broadcast %149 : vector<8x1xf32> to vector<8x128xf32>
    %152 = vector.broadcast %150 : vector<1x128xf32> to vector<8x128xf32>
    %153 = arith.addf %151, %152 : vector<8x128xf32>
    %154 = math.tanh %153 : vector<8x128xf32>
    %c14 = arith.constant 14 : index
    %155 = memref.load %arg2[%c14] : memref<16xf32, #tpu.memory_space<smem>>
    %156 = vector.broadcast %155 : f32 to vector<8x128xf32>
    %157 = arith.mulf %156, %154 : vector<8x128xf32>
    %158 = arith.addf %148, %157 : vector<8x128xf32>
    %159 = vector.extract_strided_slice %7 {offsets = [0, 15], sizes = [8, 1], strides = [1, 1]} : vector<8x16xf32> to vector<8x1xf32>
    %160 = vector.extract_strided_slice %2 {offsets = [15, 0], sizes = [1, 128], strides = [1, 1]} : vector<16x128xf32> to vector<1x128xf32>
    %161 = vector.broadcast %159 : vector<8x1xf32> to vector<8x128xf32>
    %162 = vector.broadcast %160 : vector<1x128xf32> to vector<8x128xf32>
    %163 = arith.addf %161, %162 : vector<8x128xf32>
    %164 = math.tanh %163 : vector<8x128xf32>
    %c15 = arith.constant 15 : index
    %165 = memref.load %arg2[%c15] : memref<16xf32, #tpu.memory_space<smem>>
    %166 = vector.broadcast %165 : f32 to vector<8x128xf32>
    %167 = arith.mulf %166, %164 : vector<8x128xf32>
    %168 = arith.addf %158, %167 : vector<8x128xf32>
    %169 = tpu.iota {dimensions = array<i32: 1>} : vector<8x128xi32>
    %c8_i32 = arith.constant 8 : i32
    %170 = vector.broadcast %c8_i32 : i32 to vector<8x128xi32>
    %171 = arith.cmpi slt, %169, %170 : vector<8x128xi32>
    %cst_12 = arith.constant -1.000000e+30 : f32
    %172 = vector.broadcast %cst_12 : f32 to vector<8x128xf32>
    %173 = arith.select %171, %168, %172 : vector<8x128xi1>, vector<8x128xf32>
    %cst_13 = arith.constant dense<0xFF800000> : vector<8xf32>
    %174 = vector.multi_reduction <maximumf>, %173, %cst_13 [1] : vector<8x128xf32> to vector<8xf32>
    %175 = vector.shape_cast %174 : vector<8xf32> to vector<8x1xf32>
    %176 = vector.broadcast %175 : vector<8x1xf32> to vector<8x128xf32>
    %177 = arith.subf %173, %176 : vector<8x128xf32>
    %178 = math.exp %177 : vector<8x128xf32>
    %cst_14 = arith.constant dense<0.000000e+00> : vector<8xf32>
    %179 = vector.multi_reduction <add>, %178, %cst_14 [1] : vector<8x128xf32> to vector<8xf32>
    %180 = vector.shape_cast %179 : vector<8xf32> to vector<8x1xf32>
    %181 = vector.broadcast %180 : vector<8x1xf32> to vector<8x128xf32>
    %182 = arith.divf %178, %181 : vector<8x128xf32>
    %cst_15 = arith.constant dense<0.000000e+00> : vector<8x128xf32>
    %183 = tpu.matmul %182, %6, %cst_15 {dimension_numbers = #tpu.dot_dimension_numbers<[1], [0], [0], [1], [0, 0, 1, 1], [], []>} : vector<8x128xf32>, vector<128x128xf32>, vector<8x128xf32> -> vector<8x128xf32>
    %c0_16 = arith.constant 0 : index
    %c0_17 = arith.constant 0 : index
    %c0_18 = arith.constant 0 : index
    %184 = vector.load %arg7[%c0_16, %c0_17, %c0_18] : memref<1x8x128xf32, #tpu.memory_space<vmem>>, vector<1x8x128xf32>
    %185 = vector.shape_cast %184 : vector<1x8x128xf32> to vector<8x128xf32>
    %186 = vector.shape_cast %183 : vector<8x128xf32> to vector<1x8x128xf32>
    tpu.vector_store %arg7[%c0_16, %c0_17, %c0_18], %186 {strides = array<i32>} : memref<1x8x128xf32, #tpu.memory_space<vmem>>, vector<1x8x128xf32>,
    %c0_19 = arith.constant 0 : index
    %c0_20 = arith.constant 0 : index
    %c0_21 = arith.constant 0 : index
    %187 = vector.load %arg8[%c0_19, %c0_20, %c0_21] : memref<1x8x128xf32, #tpu.memory_space<vmem>>, vector<1x8x128xf32>
    %188 = vector.shape_cast %187 : vector<1x8x128xf32> to vector<8x128xf32>
    %189 = vector.shape_cast %182 : vector<8x128xf32> to vector<1x8x128xf32>
    tpu.vector_store %arg8[%c0_19, %c0_20, %c0_21], %189 {strides = array<i32>} : memref<1x8x128xf32, #tpu.memory_space<vmem>>, vector<1x8x128xf32>,
    return
  }
  func.func @transform_0(%arg0: i32, %arg1: i32) -> i32 {
    %c0_i32 = arith.constant 0 : i32
    %c0_i32_0 = arith.constant 0 : i32
    return %c0_i32 : i32
  }
  func.func @transform_1(%arg0: i32, %arg1: i32) -> (i32, i32) {
    %c0_i32 = arith.constant 0 : i32
    %c0_i32_0 = arith.constant 0 : i32
    %c0_i32_1 = arith.constant 0 : i32
    return %c0_i32, %c0_i32_0 : i32, i32
  }
  func.func @transform_2(%arg0: i32, %arg1: i32) -> (i32, i32, i32) {
    %c0_i32 = arith.constant 0 : i32
    %c0_i32_0 = arith.constant 0 : i32
    %c0_i32_1 = arith.constant 0 : i32
    return %arg0, %c0_i32, %c0_i32_0 : i32, i32, i32
  }
  func.func @transform_3(%arg0: i32, %arg1: i32) -> (i32, i32, i32) {
    %c0_i32 = arith.constant 0 : i32
    %c0_i32_0 = arith.constant 0 : i32
    return %arg0, %arg1, %c0_i32 : i32, i32, i32
  }
  func.func @transform_4(%arg0: i32, %arg1: i32) -> (i32, i32, i32) {
    %c0_i32 = arith.constant 0 : i32
    %c0_i32_0 = arith.constant 0 : i32
    %c0_i32_1 = arith.constant 0 : i32
    return %arg0, %c0_i32, %c0_i32_0 : i32, i32, i32
  }
  func.func @transform_5(%arg0: i32, %arg1: i32) -> (i32, i32, i32) {
    %c0_i32 = arith.constant 0 : i32
    %c0_i32_0 = arith.constant 0 : i32
    return %arg0, %arg1, %c0_i32 : i32, i32, i32
  }
  func.func @transform_6(%arg0: i32, %arg1: i32) -> (i32, i32, i32) {
    %c0_i32 = arith.constant 0 : i32
    %c0_i32_0 = arith.constant 0 : i32
    return %arg0, %arg1, %c0_i32 : i32, i32, i32
  }
}

</mosaic_0001>

<bundles_post_ra>
// kernel: tpu_custom_call.1
= control target key start
LH: loop header
LB: loop body
LE: loop exit
PB: predicated region body
PF: predicated region fallthrough
CT: control target
= control target key end

     0   :  { %s2131_s0 = inlined_call_operand.hbm [shape: f32[16], index: 0, kind: input, shape index: {}]   ;;  %s2132_s1 = inlined_call_operand.hbm [shape: f32[16,32], index: 1, kind: input, shape index: {}]   ;;  %s2133_s2 = inlined_call_operand.hbm [shape: f32[2,16,128], index: 2, kind: input, shape index: {}]   ;;  %s2134_s3 = inlined_call_operand.hbm [shape: f32[2,8,32], index: 3, kind: input, shape index: {}]   ;;  %s2135_s4 = inlined_call_operand.hbm [shape: f32[2,128,128], index: 4, kind: input, shape index: {}]   ;;  %s2136_s5 = inlined_call_operand.hbm [shape: f32[2,8,128], index: 5, kind: output, shape index: {0}]   ;;  %s2137_s6 = inlined_call_operand.hbm [shape: f32[2,8,128], index: 6, kind: output, shape index: {1}]  }
   0x1   :  { %2154 = sst [smem:[#allocation27_spill]] %s2133_s2 }
   0x2   :  { %2155 = sst [smem:[#allocation28_spill]] %s2136_s5 }
   0x3   :  { %12 = vsyncpa [#allocation5], 0 }
   0x4   :  { %13 = vsyncpa [#allocation3], 0 }
   0x5   :  { %14 = vsyncpa [#allocation8], 0 }
   0x6   :  { %16 = vsyncpa [#allocation8 + $0x1], 0 }
   0x7   :  { %17 = vsyncpa [#allocation11], 0 }
   0x8   :  { %19 = vsyncpa [#allocation11 + $0x1], 0 }
   0x9   :  { %20 = vsyncpa [#allocation4], 0 }
   0xa   :  { %22 = vsyncpa [#allocation4 + $0x1], 0 }
   0xb   :  { %23 = vsyncpa [#allocation14], 0 }
   0xc   :  { %25 = vsyncpa [#allocation14 + $0x1], 0  ;;  %s1658_s21 = smov 0   ;;  %s1660_s22 = smov 0  }
   0xd   :  { %s1662_s23 = smov 0   ;;  %s1664_s24 = smov 0  }
   0xe   :  { %s1666_s25 = smov 0   ;;  %s1668_s26 = smov 0  }
   0xf LB: > { %2156 = sst [smem:[#allocation21_spill]] %s1573_s21  ;;  %s43_s27 = sadd.s32 1, %s1589_s25  ;;  %s1593_s26 = sphi %s1668_s26, %s31_s26   ;;  %s1589_s25 = sphi %s1666_s25, %s2193_s25   ;;  %s1585_s24 = sphi %s1664_s24, %s2192_s24   ;;  %s1581_s23 = sphi %s1662_s23, %s2188_s23   ;;  %s1577_s22 = sphi %s1660_s22, %s2191_s22   ;;  %s1573_s21 = sphi %s1658_s21, %s2190_s21  }
  0x10   : > { %2157 = sst [smem:[#allocation22_spill]] %s1581_s23  ;;  %s92_s28 = sadd.s32 1, %s1581_s23 }
  0x11   : > { %2158 = sst [smem:[#allocation23_spill]] %s1593_s26  ;;  %p45_p0 = scmp.ge.s32.totalorder %s43_s27, 2 }
  0x12   : > { %p2138_p1 = scmp.ne.s32.totalorder %s1581_s23, %s1577_s22  ;;  %p100_p2 = scmp.eq.s32.totalorder %s1593_s26, 0 }
  0x13   : > { %s2195_s27 = smov (%p45_p0, %s43_s27), 0  ;;  %p1208_p6 = scmp.lt.s32.totalorder %s1593_s26, 2 }
  0x14   : > { %2159 = sst [smem:[#allocation24_spill]] %s2195_s27  ;;  %p1698_p3 = por %p100_p2, %p2138_p1 }
  0x15   : > { %s89_s30 = ssub.s32 %s1589_s25, %s2195_s27  ;;  %s261_s7 = sand.u32 1, %s1593_s26  }
  0x16   : > { %p90_p5 = scmp.eq.s32.totalorder %s89_s30, 0  ;;  %s1708_s8 = sand.u32 1, %s1581_s23  }
  0x17   : > { %s1032_s10 = sshll.u32 %s1708_s8, 4  ;;  %s1072_s11 = sshll.u32 %s1589_s25, 8 }
  0x18   : > { %s1711_s9 = scalar_select %p90_p5, %s1581_s23, %s92_s28  }
  0x19   : > { %s2162_s2 = sld [smem:[#allocation27_spill]]  ;;  %s265_s15 = scalar_lea.vmem [#allocation7], %s1032_s10 }
  0x1a   : > { %2161 = sst [smem:[#allocation25_spill]] %s1711_s9  ;;  %s272_s16 = sshll.u32 %s265_s15, 4  ;;  %s1720_s16 = int_to_ptr.vmem [resolvable:$true] %s272_s16 }
  0x1b   : > { %p1724_p7 = pnand %p1208_p6, %p1698_p3  ;;  %s1728_s18 = scalar_lea.sflag [#allocation8], %s261_s7 }
  0x1d   : > { %p1734_p9 = pneg %p1724_p7 }
  0x1f   : > { %s1718_s14 = scalar_lea.hbm %s2162_s2, %s1072_s11  ;;  %s1341_s30 = scalar_lea.hbm %s2162_s2, 512 }
  0x20   : > { %s1336_s19 = scalar_lea.hbm %s1718_s14, 256  ;;  %p1342_p12 = scmp.lt.u32.totalorder %s1718_s14, %s2162_s2 }
  0x21   : > { %p1337_p8 = scmp.ne.s32.totalorder %s1718_s14, %s1336_s19  ;;  %p1343_p13 = scmp.lt.u32.totalorder %s1341_s30, %s1336_s19 }
  0x22   : > { %p1345_p2 = scmp.lt.u32.totalorder %s1336_s19, %s1718_s14 }
  0x23   : > { %p1339_p10 = pnand %p1734_p9, %p1337_p8  ;;  %p1344_p0 = por %p1343_p13, %p1342_p12 }
  0x25   : > { %p1340_p11 = pneg %p1339_p10  ;;  %p1346_p3 = por %p1345_p2, %p1344_p0 }
  0x27   : > { %p1347_p5 = pnand %p1346_p3, %p1340_p11 }
  0x29   : > { %1350 = shalt.err (!%p1347_p5)
}
  0x2a   : > { %s1351_s7 = scalar_lea.vmem %s1720_s16, 256  ;;  %s1595_s12 = smov [#allocation7]  }
  0x2b   : > { %p1352_p6 = scmp.ne.s32.totalorder %s1720_s16, %s1351_s7  ;;  %s1356_s13 = sshll.u32 %s1595_s12, 4  ;;  %s1357_s13 = int_to_ptr.vmem [resolvable:$false] %s1356_s13 }
  0x2c   : > { %s1358_s15 = scalar_lea.vmem %s1357_s13, 512  ;;  %p1359_p4 = scmp.lt.s32.totalorder %s1720_s16, %s1357_s13 }
  0x2d   : > { %p1354_p8 = pnand %p1352_p6, %p1734_p9  ;;  %p1360_p1 = scmp.lt.s32.totalorder %s1358_s15, %s1351_s7 }
  0x2f   : > { %p1355_p10 = pneg %p1354_p8  ;;  %p1361_p12 = por %p1360_p1, %p1359_p4 }
  0x31   : > { %p1362_p13 = pnand %p1361_p12, %p1355_p10 }
  0x33   : > { %1365 = shalt.err (!%p1362_p13)
}
  0x34   : > { %s2139_s19 = smov 128   ;;  %s2141_s28 = smov 8  }
  0x35   : > { %1192 = dma.hbm_to_vmem [thread:$0]  (!%p1724_p7), %s1718_s14, 256, %s1720_s16, %s1728_s18, %s2139_s19, %s2139_s19, %s2141_s28  }
  0x36   : > { %s1762_s29 = sadd.s32 4294967295, %s1593_s26   ;;  %s1027_s30 = sadd.s32 4294967294, %s1593_s26  }
  0x37   : > { %p105_p1 = scmp.ne.s32.totalorder %s1577_s22, %s1573_s21  ;;  %p2150_p4 = scmp.eq.s32.totalorder %s1762_s29, 0 }
  0x38   : > { %p185_p11 = scmp.eq.s32.totalorder %s1762_s29, 1  ;;  %p191_p0 = scmp.eq.s32.totalorder %s1027_s30, 1 }
  0x39   : > { %p1028_p2 = scmp.ge.s32.totalorder %s1593_s26, 1  ;;  %p1772_p3 = por %p2150_p4, %p105_p1 }
  0x3a   : > { %p2166_p5 = scmp.ne.s32.totalorder %s1581_s23, %s1577_s22  ;;  %p1783_p8 = por %p191_p0, %p105_p1 }
  0x3b   : > { %s2165_s10 = scalar_select %p1772_p3, 1, 0 }
  0x3c   : > { %p1779_p6 = por %p185_p11, %p2166_p5  ;;  %p226_p10 = scmp.lt.s32.totalorder %s1593_s26, 3 }
  0x3d   : > { %s2168_s16 = scalar_select %p1783_p8, 1, 0 }
  0x3e   : > { %s2167_s14 = scalar_select %p1779_p6, 1, 0 }
  0x3f   : > { %2169 = sst [smem:[#allocation26_spill]] %s2168_s16  ;;  %p1788_p12 = pnand %p1028_p2, %p226_p10 }
  0x40   : > { %s1598_s7 = smov [#allocation6]   ;;  %s1035_s13 = sshll.u32 %s1708_s8, 3 }
  0x41   : > { %s2170_s11 = scalar_select %p1788_p12, 1, 0 }
  0x42   : > { %s247_s12 = sshll.u32 %s1598_s7, 4  ;;  %p1182_p13 = pneg %p1788_p12  ;;  %s1795_s12 = int_to_ptr.vmem [resolvable:$true] %s247_s12 }
  0x43   : > { %s1036_s15 = sshll.u32 %s1589_s25, 7  ;;  %s286_s27 = scalar_lea.vmem [#allocation9], %s1035_s13 }
  0x44   : > { %p1800_p11 = pnand %p1182_p13, %p2150_p4  ;;  %s1807_s2 = scalar_lea.hbm %s2134_s3, %s1036_s15 }
  0x45   : > { %s294_s7 = sshll.u32 %s286_s27, 4  ;;  %s1366_s26 = scalar_lea.hbm %s2131_s0, 16  ;;  %s1809_s7 = int_to_ptr.vmem [resolvable:$true] %s294_s7 }
  0x46   : > { %p1367_p1 = scmp.ne.s32.totalorder %s2131_s0, %s1366_s26  ;;  %p1368_p0 = pneg %p1800_p11 }
  0x47   : > { %p1373_p10 = scmp.lt.u32.totalorder %s1366_s26, %s2131_s0 }
  0x48   : > { %p1369_p2 = pnand %p1368_p0, %p1367_p1 }
  0x4a   : > { %p1370_p5 = pneg %p1369_p2 }
  0x4c   : > { %p1375_p13 = pnand %p1373_p10, %p1370_p5 }
  0x4e   : > { %1378 = shalt.err (!%p1375_p13)
}
  0x4f   : > { %s1599_s27 = smov [#allocation2]   ;;  %s1379_s13 = scalar_lea.hbm %s2132_s1, 256 }
  0x50   : > { %1185 = dma.hbm_to_smem (!%p1800_p11), %s2131_s0, 16, %s1599_s27, [#allocation5]  }
  0x51   : > { %p1380_p1 = scmp.ne.s32.totalorder %s2132_s1, %s1379_s13  ;;  %p1386_p10 = scmp.lt.u32.totalorder %s1379_s13, %s2132_s1 }
  0x53   : > { %p1382_p2 = pnand %p1380_p1, %p1368_p0 }
  0x55   : > { %p1383_p5 = pneg %p1382_p2 }
  0x57   : > { %p1388_p13 = pnand %p1386_p10, %p1383_p5 }
  0x59   : > { %1391 = shalt.err (!%p1388_p13)
}
  0x5a   : > { %s1392_s28 = scalar_lea.vmem %s1795_s12, 256  ;;  %p1400_p3 = scmp.lt.s32.totalorder %s1795_s12, %s1795_s12 }
  0x5b   : > { %p1393_p4 = scmp.ne.s32.totalorder %s1795_s12, %s1392_s28  ;;  %p1401_p1 = scmp.lt.s32.totalorder %s1392_s28, %s1392_s28 }
  0x5d   : > { %p1395_p8 = pnand %p1393_p4, %p1368_p0  ;;  %p1402_p2 = por %p1401_p1, %p1400_p3 }
  0x5f   : > { %p1396_p6 = pneg %p1395_p8 }
  0x61   : > { %p1403_p12 = pnand %p1402_p2, %p1396_p6 }
  0x63   : > { %1406 = shalt.err (!%p1403_p12)
}
  0x64   : > { %s2172_s5 = smov 8   ;;  %s2173_s27 = smov 128  }
  0x65   : > { %1188 = dma.hbm_to_vmem [thread:$0]  (!%p1800_p11), %s2132_s1, 256, %s1795_s12, [#allocation3], %s2173_s27, %s2173_s27, %s2172_s5  }
  0x66   : > { %s1407_s21 = scalar_lea.hbm %s1807_s2, 128  ;;  %s1412_s13 = scalar_lea.hbm %s2134_s3, 256 }
  0x67   : > { %p1408_p4 = scmp.ne.s32.totalorder %s1807_s2, %s1407_s21  ;;  %p1413_p8 = scmp.lt.u32.totalorder %s1807_s2, %s2134_s3 }
  0x68   : > { %p1414_p12 = scmp.lt.u32.totalorder %s1412_s13, %s1407_s21  ;;  %p1416_p5 = scmp.lt.u32.totalorder %s1407_s21, %s1807_s2 }
  0x69   : > { %p1410_p3 = pnand %p1408_p4, %p1734_p9 }
  0x6a   : > { %p1415_p0 = por %p1414_p12, %p1413_p8 }
  0x6b   : > { %p1411_p6 = pneg %p1410_p3 }
  0x6c   : > { %p1417_p10 = por %p1416_p5, %p1415_p0 }
  0x6e   : > { %p1418_p13 = pnand %p1417_p10, %p1411_p6 }
  0x70   : > { %1421 = shalt.err (!%p1418_p13)
}
  0x71   : > { %s1422_s12 = scalar_lea.vmem %s1809_s7, 128  ;;  %s1600_s19 = smov [#allocation9]  }
  0x72   : > { %p1423_p11 = scmp.ne.s32.totalorder %s1809_s7, %s1422_s12  ;;  %s1427_s28 = sshll.u32 %s1600_s19, 4  ;;  %s1428_s28 = int_to_ptr.vmem [resolvable:$false] %s1427_s28 }
  0x73   : > { %s1429_s23 = scalar_lea.vmem %s1428_s28, 256  ;;  %p1430_p4 = scmp.lt.s32.totalorder %s1809_s7, %s1428_s28 }
  0x74   : > { %p1425_p1 = pnand %p1423_p11, %p1734_p9  ;;  %p1431_p3 = scmp.lt.s32.totalorder %s1429_s23, %s1422_s12 }
  0x76   : > { %p1426_p2 = pneg %p1425_p1  ;;  %p1432_p8 = por %p1431_p3, %p1430_p4 }
  0x78   : > { %p1433_p12 = pnand %p1432_p8, %p1426_p2 }
  0x7a   : > { %1436 = shalt.err (!%p1433_p12)
}
  0x7b   : > { %1195 = dma.hbm_to_vmem [thread:$0]  (!%p1724_p7), %s1807_s2, 128, %s1809_s7, %s1728_s18  }
  0x7c   : > { %s1037_s9 = sshll.u32 %s1708_s8, 7  ;;  %s1073_s21 = sshll.u32 %s1589_s25, 11 }
  0x7d   : > { %s1885_s13 = scalar_lea.hbm %s2135_s4, %s1073_s21  ;;  %s305_s15 = scalar_lea.vmem [#allocation10], %s1037_s9 }
  0x7e   : > { %s312_s26 = sshll.u32 %s305_s15, 4  ;;  %s302_s12 = scalar_lea.sflag [#allocation11], %s1708_s8  ;;  %s1887_s26 = int_to_ptr.vmem [resolvable:$true] %s312_s26 }
  0x7f   : > { %s1437_s19 = scalar_lea.hbm %s1885_s13, 2048  ;;  %s1442_s7 = scalar_lea.hbm %s2135_s4, 4096 }
  0x80   : > { %p1438_p6 = scmp.ne.s32.totalorder %s1885_s13, %s1437_s19  ;;  %p1443_p10 = scmp.lt.u32.totalorder %s1885_s13, %s2135_s4 }
  0x81   : > { %p1444_p13 = scmp.lt.u32.totalorder %s1442_s7, %s1437_s19  ;;  %p1446_p1 = scmp.lt.u32.totalorder %s1437_s19, %s1885_s13 }
  0x82   : > { %p1440_p0 = pnand %p1438_p6, %p1734_p9 }
  0x83   : > { %p1445_p11 = por %p1444_p13, %p1443_p10 }
  0x84   : > { %p1441_p5 = pneg %p1440_p0 }
  0x85   : > { %p1447_p2 = por %p1446_p1, %p1445_p11 }
  0x87   : > { %p1448_p4 = pnand %p1447_p2, %p1441_p5 }
  0x89   : > { %1451 = shalt.err (!%p1448_p4)
}
  0x8a   : > { %s1452_s9 = scalar_lea.vmem %s1887_s26, 2048  ;;  %s1601_s21 = smov [#allocation10]  }
  0x8b   : > { %p1453_p3 = scmp.ne.s32.totalorder %s1887_s26, %s1452_s9  ;;  %s1457_s16 = sshll.u32 %s1601_s21, 4  ;;  %s1458_s16 = int_to_ptr.vmem [resolvable:$false] %s1457_s16 }
  0x8c   : > { %s1459_s30 = scalar_lea.vmem %s1458_s16, 4096  ;;  %p1460_p6 = scmp.lt.s32.totalorder %s1887_s26, %s1458_s16 }
  0x8d   : > { %p1455_p8 = pnand %p1453_p3, %p1734_p9  ;;  %p1461_p0 = scmp.lt.s32.totalorder %s1459_s30, %s1452_s9 }
  0x8f   : > { %p1456_p12 = pneg %p1455_p8  ;;  %p1462_p10 = por %p1461_p0, %p1460_p6 }
  0x91   : > { %p1463_p13 = pnand %p1462_p10, %p1456_p12 }
  0x93   : > { %1466 = shalt.err (!%p1463_p13)
}
  0x94   : > { %1198 = dma.hbm_to_vmem [thread:$0]  (!%p1724_p7), %s1885_s13, 2048, %s1887_s26, %s302_s12, %s2173_s27, %s2173_s27, %s2172_s5  }
  0x95   : > { %p2174_p9 = scmp.ne.s32.totalorder %s2170_s11, 0 }
  0x96   : > { %p2175_p5 = scmp.eq.s32.totalorder (!%p2174_p9), %s1762_s29, 0 }
  0x97   : > { %324 = sbr.rel (%p2174_p9) target bundleno = 1124 (0x464), region = 40 }
  0x9e   : > { %1548 = dma.done.wait (%p2175_p5), [#allocation5], 16   ;;  %p2176_p11 = pmov %p2175_p5 }
  0x9f   : > { %p2177_p1 = pmov %p2175_p5 }
  0xa0   : > { %1550 = vsyncadd (%p2176_p11), [#allocation5], 4294967280 }
  0xa1   : > { %1552 = dma.done.wait (%p2177_p1), [#allocation3], 256   ;;  %p2178_p2 = pmov %p2177_p1 }
  0xa2   : > { %s334_s8 = sand.u32 1, %s1762_s29   ;;  %s1928_s17 = sand.u32 1, %s1577_s22  }
  0xa3   : > { %1554 = vsyncadd (%p2178_p2), [#allocation3], 4294967040  ;;  %s1043_s20 = sshll.u32 %s1928_s17, 4  ;;  %s335_s11 = scalar_lea.sflag [#allocation8], %s334_s8 }
  0xa4   : > { %s1931_s5 = scalar_lea.vmem [#allocation7], %s1043_s20  ;;  %p2179_p7 = scmp.ne.s32.totalorder %s2165_s10, 0 }
  0xa6   : > { %1556 = dma.done.wait (%p2179_p7), %s335_s11, 384  }
  0xa7   : > { %1558 = vsyncadd (%p2179_p7), %s335_s11, 4294966912  ;;  %s1938_s27 = sshll.u32 %s1928_s17, 3  ;;  %s1045_s29 = sshll.u32 %s1928_s17, 7 }
  0xa8   : > { %s347_s13 = scalar_lea.vmem [#allocation9], %s1938_s27  ;;  %s353_s15 = scalar_lea.sflag [#allocation11], %s1928_s17 }
  0xa9   : > { %s1943_s26 = scalar_lea.vmem [#allocation10], %s1045_s29 }
  0xaa   : > { %1560 = dma.done.wait (%p2179_p7), %s353_s15, 2048  }
  0xab   : > { %1562 = vsyncadd (%p2179_p7), %s353_s15, 4294965248 }
  0xac   : > { %361 = sfence }
  0xad   : > { %v401_v0 = vld [vmem:[#allocation6] sm:$0xff]  ;;  %v402_v1 = vld [vmem:[#allocation6 + $0x8] sm:$0xff]  ;;  %vm422_vm0 = vcmask 261120   ;;  %v1602_v2 = vmov 0.0|0.0   ;;  %vm1603_vm2 = vmmov 0   ;;  %v1604_v4 = vmov 0.0  }
  0xae   : > { %1136 = vmatprep.subr.bf16.mxu0 %v1602_v2  ;;  %v1137_v3 = vpack.c.bf16 %v402_v1, %v401_v0  ;;  %vm1138_vm1 = vmpackc.low %vm422_vm0, %vm422_vm0  ;;  %1098 = vmatprep.mubr.msk.f32.mxu0 %vm1603_vm2, %v1604_v4  ;;  %v1605_v5 = vmov 2   ;;  %v1606_v6 = vmov 0   ;;  %v405_v7 = vld [vmem:[%s347_s13] sm:$0xff]  ;;  %v1607_v10 = vmov 3   ;;  %s513_s10 = sld [smem:[#allocation2]]  ;;  %s1051_s12 = sld [smem:[#allocation2 + $0x1]] }
  0xaf   : > { %1285 = vset.pattern.permute.xlu1 %v1605_v5  ;;  %1283 = vset.pattern.permute.xlu0 %v1606_v6  ;;  %v1608_v11 = vmov 1   ;;  %v1609_v12 = vmov 4   ;;  %v1610_v13 = vmov 5   ;;  %v1611_v14 = vmov 6   ;;  %v403_v27 = vld [vmem:[%s1931_s5] sm:$0xff]  ;;  %s1973_s19 = sld [smem:[#allocation2 + $0x2]] }
  0xb0   : > { %1139 = vmatpush3.bf16.xpose.msk.msra.mxu0 %vm1138_vm1, %v1137_v3  ;;  %1140 = vmatprep.subr.bf16.mxu1 %v1602_v2  ;;  %v1612_v15 = vmov 8   ;;  %v1613_v16 = vmov 7   ;;  %v1614_v17 = vmov 11   ;;  %v1615_v18 = vmov 9   ;;  %s1977_s2 = sld [smem:[#allocation2 + $0x3]]  ;;  %s1979_s18 = sld [smem:[#allocation2 + $0x4]] }
  0xb1   : > { %1133 = vmatprep.mubr.msk.f32.mxu1 %vm1603_vm2, %v1604_v4  ;;  %v1616_v19 = vmov 14   ;;  %v1617_v20 = vmov 10   ;;  %v1618_v21 = vmov 15   ;;  %v1619_v22 = vmov 12   ;;  %v1983_v54 = vld [vmem:[%s1931_s5 + $0x8] sm:$0xff]  ;;  %s1985_s7 = sld [smem:[#allocation2 + $0x5]] }
  0xb2   : > { %v1620_v23 = vmov 13   ;;  %v507_v24 = vlaneseq  ;;  %s1991_s28 = sld [smem:[#allocation2 + $0x6]]  ;;  %s1996_s23 = sld [smem:[#allocation2 + $0x7]] }
  0xb3   : > { %s2000_s9 = sld [smem:[#allocation2 + $0x8]]  ;;  %s1059_s21 = sld [smem:[#allocation2 + $0x9]] }
  0xb4   : > { %v1955_v25 = vshrl.u32 %v507_v24, 7  ;;  %v514_v58 = vstv %s513_s10  ;;  %v528_v59 = vstv %s1051_s12  ;;  %s2012_s16 = sld [smem:[#allocation2 + $0xa]]  ;;  %s1061_s30 = sld [smem:[#allocation2 + $0xb]] }
  0xb5   : > { %v542_v1 = vstv %s1973_s19  ;;  %s1062_s8 = sld [smem:[#allocation2 + $0xc]]  ;;  %s1063_s20 = sld [smem:[#allocation2 + $0xd]] }
  0xb6   : > { %v509_v26 = vsub.s32 0, %v1955_v25  ;;  %v537_v28 = vsub.s32 2, %v1955_v25  ;;  %v523_v29 = vsub.s32 1, %v1955_v25  ;;  %v551_v31 = vsub.s32 3, %v1955_v25  ;;  %s1064_s11 = sld [smem:[#allocation2 + $0xe]]  ;;  %s1065_s5 = sld [smem:[#allocation2 + $0xf]] }
  0xb7   : > { %1099 = vmatmul.mubr.msk.f32.vlgmr.msra.gmra.mrb[0].mxu0 %vm422_vm0, %v405_v7  ;;  %v565_v38 = vsub.s32 4, %v1955_v25  ;;  %v579_v39 = vsub.s32 5, %v1955_v25  ;;  %v593_v47 = vsub.s32 6, %v1955_v25  ;;  %v607_v53 = vsub.s32 7, %v1955_v25  ;;  %s400_s29 = scalar_lea.vmem [#allocation13], %s1938_s27  ;;  %s1068_s13 = sshll.u32 %s1585_s24, 7 }
  0xb8   : > { %v510_v30 = vrot.slane %v403_v27, %v509_v26  ;;  %v538_v32 = vrot.slane %v403_v27, %v537_v28  ;;  %v524_v35 = vrot.slane %v403_v27, %v523_v29  ;;  %v552_v37 = vrot.slane %v403_v27, %v551_v31  ;;  %s846_s12 = sshll.u32 %s400_s29, 4  ;;  %s818_s19 = scalar_lea.sflag [#allocation14], %s1928_s17  ;;  %s847_s12 = int_to_ptr.vmem [resolvable:$true] %s846_s12 }
  0xb9   : > { %v566_v45 = vrot.slane %v403_v27, %v565_v38  ;;  %v580_v46 = vrot.slane %v403_v27, %v579_v39  ;;  %v594_v52 = vrot.slane %v403_v27, %v593_v47  ;;  %v622_v60 = vrot.slane %v1983_v54, %v509_v26  ;;  %p2180_p3 = scmp.ne.s32.totalorder %s2167_s14, 0 }
  0xba   : > { %v608_v61 = vrot.slane %v403_v27, %v607_v53  ;;  %v556_v7 = vstv %s1977_s2  ;;  %v664_v26 = vrot.slane %v1983_v54, %v551_v31  ;;  %v650_v27 = vrot.slane %v1983_v54, %v537_v28  ;;  %s1467_s2 = scalar_lea.vmem %s847_s12, 128 }
  0xbb   : > { %v678_v31 = vrot.slane %v1983_v54, %v565_v38  ;;  %v640_v38 = vstv %s1059_s21  ;;  %p1468_p4 = scmp.ne.s32.totalorder %s847_s12, %s1467_s2 }
  0xbd   : > { %p1469_p8 = pnand %p1468_p4, %p2180_p3 }
  0xbf   : > { %p1470_p12 = pneg %p1469_p8 }
 0x18a   : > { %v498_v8 = vpop.f32.mrb[0].mxu0 }
 0x18b   : > { %532 = vperm.xlu1 %1285, %v498_v8   ;;  %504 = vperm.xlu0 %1283, %v498_v8   ;;  %v1100_v9 = vpop.f32.mrb[1].mxu0 }
 0x18f   : > { %1286 = vset.pattern.permute.xlu1 %v1607_v10  ;;  %1284 = vset.pattern.permute.xlu0 %v1608_v11 }
 0x190   : > { %546 = vperm.xlu1 %1286, %v498_v8   ;;  %518 = vperm.xlu0 %1284, %v498_v8  }
 0x194   : > { %1287 = vset.pattern.permute.xlu1 %v1609_v12  ;;  %1288 = vset.pattern.permute.xlu0 %v1610_v13  ;;  %v636_v13 = vrot.slane %v1983_v54, %v523_v29 }
 0x195   : > { %560 = vperm.xlu1 %1287, %v498_v8   ;;  %574 = vperm.xlu0 %1288, %v498_v8  }
 0x199   : > { %1289 = vset.pattern.permute.xlu1 %v1611_v14  ;;  %1291 = vset.pattern.permute.xlu0 %v1612_v15 }
 0x19a   : > { %588 = vperm.xlu1 %1289, %v498_v8   ;;  %616 = vperm.xlu0 %1291, %v498_v8  }
 0x19e   : > { %1290 = vset.pattern.permute.xlu1 %v1613_v16  ;;  %1294 = vset.pattern.permute.xlu0 %v1614_v17 }
 0x19f   : > { %602 = vperm.xlu1 %1290, %v498_v8   ;;  %658 = vperm.xlu0 %1294, %v498_v8  }
 0x1a3   : > { %1292 = vset.pattern.permute.xlu1 %v1615_v18  ;;  %1297 = vset.pattern.permute.xlu0 %v1616_v19  ;;  %v584_v19 = vstv %s1985_s7 }
 0x1a4   : > { %630 = vperm.xlu1 %1292, %v498_v8   ;;  %700 = vperm.xlu0 %1297, %v498_v8  }
 0x1a8   : > { %1293 = vset.pattern.permute.xlu1 %v1617_v20  ;;  %1299 = vset.pattern.permute.xlu0 %v1618_v21 }
 0x1a9   : > { %644 = vperm.xlu1 %1293, %v498_v8  }
 0x1ad   : > { %1295 = vset.pattern.permute.xlu1 %v1619_v22 }
 0x1ae   : > { %672 = vperm.xlu1 %1295, %v498_v8  }
 0x1b2   : > { %1296 = vset.pattern.permute.xlu1 %v1620_v23  ;;  %v598_v23 = vstv %s1991_s28 }
 0x1b3   : > { %686 = vperm.xlu1 %1296, %v498_v8  }
 0x1b7   : > { %1298 = vset.pattern.permute.xlu1 %v1618_v21 }
 0x1b8   : > { %714 = vperm.xlu1 %1298, %v498_v8   ;;  %v570_v8 = vstv %s1979_s18  ;;  %s1621_s18 = smov [#allocation13]  }
 0x1b9   : > { %s1471_s7 = sshll.u32 %s1621_s18, 4  ;;  %s1472_s7 = int_to_ptr.vmem [resolvable:$false] %s1471_s7 }
 0x1ba   : > { %s1473_s28 = scalar_lea.vmem %s1472_s7, 256  ;;  %p1474_p6 = scmp.lt.s32.totalorder %s847_s12, %s1472_s7 }
 0x1bb   : > { %p1475_p0 = scmp.lt.s32.totalorder %s1473_s28, %s1467_s2 }
 0x1bd   : > { %p1476_p10 = por %p1475_p0, %p1474_p6 }
 0x1bf   : > { %p1477_p13 = pnand %p1476_p10, %p1470_p12 }
 0x20a   : > { %v533_v33 = vpop.permute.xlu1 %532  ;;  %v505_v34 = vpop.permute.xlu0 %504 }
 0x20b   : > { %v511_v36 = vadd.f32 %v510_v30, %v505_v34  ;;  %v539_v40 = vadd.f32 %v538_v32, %v533_v33 }
 0x20d   : > { %1300 = vtanh.f32 %v511_v36 }
 0x20e   : > { %1302 = vtanh.f32 %v539_v40 }
 0x20f   : > { %v547_v41 = vpop.permute.xlu1 %546  ;;  %v519_v42 = vpop.permute.xlu0 %518 }
 0x210   : > { %v525_v43 = vadd.f32 %v524_v35, %v519_v42  ;;  %v553_v44 = vadd.f32 %v552_v37, %v547_v41  ;;  %v612_v37 = vstv %s1996_s23 }
 0x212   : > { %1304 = vtanh.f32 %v525_v43 }
 0x213   : > { %1306 = vtanh.f32 %v553_v44  ;;  %v706_v44 = vrot.slane %v1983_v54, %v593_v47 }
 0x214   : > { %v561_v48 = vpop.permute.xlu1 %560  ;;  %v575_v49 = vpop.permute.xlu0 %574 }
 0x215   : > { %v567_v50 = vadd.f32 %v566_v45, %v561_v48  ;;  %v581_v51 = vadd.f32 %v580_v46, %v575_v49  ;;  %v626_v46 = vstv %s2000_s9 }
 0x217   : > { %1308 = vtanh.f32 %v567_v50  ;;  %v1301_v57 = vpop.eup %1300 }
 0x218   : > { %1310 = vtanh.f32 %v581_v51  ;;  %v1303_v62 = vpop.eup %1302  ;;  %v515_v3 = vmul.f32 %v1301_v57, %v514_v58 }
 0x219   : > { %v589_v55 = vpop.permute.xlu1 %588  ;;  %v617_v63 = vpop.permute.xlu0 %616  ;;  %v543_v11 = vmul.f32 %v1303_v62, %v542_v1  ;;  %v720_v62 = vrot.slane %v1983_v54, %v607_v53 }
 0x21a   : > { %v595_v56 = vadd.f32 %v594_v52, %v589_v55  ;;  %v623_v9 = vadd.f32 %v622_v60, %v617_v63  ;;  %v692_v52 = vrot.slane %v1983_v54, %v579_v39  ;;  %v654_v60 = vstv %s2012_s16 }
 0x21c   : > { %1312 = vtanh.f32 %v595_v56  ;;  %v1305_v0 = vpop.eup %1304 }
 0x21d   : > { %v529_v4 = vmul.f32 %v1305_v0, %v528_v59  ;;  %v1307_v6 = vpop.eup %1306 }
 0x21e   : > { %v603_v5 = vpop.permute.xlu1 %602  ;;  %v557_v15 = vmul.f32 %v1307_v6, %v556_v7  ;;  %v659_v33 = vpop.permute.xlu0 %658  ;;  %v682_v7 = vstv %s1062_s8 }
 0x21f   : > { %v609_v10 = vadd.f32 %v608_v61, %v603_v5  ;;  %v530_v12 = vadd.f32 %v529_v4, %v515_v3  ;;  %v665_v40 = vadd.f32 %v664_v26, %v659_v33  ;;  %v668_v3 = vstv %s1061_s30  ;;  %v406_v26 = vld [vmem:[%s1943_s26] sm:$0xff] }
 0x220   : > { %v410_v33 = vld [vmem:[%s1943_s26 + $0x20] sm:$0xff] }
 0x221   : > { %v1309_v14 = vpop.eup %1308  ;;  %1314 = vtanh.f32 %v609_v10  ;;  %v544_v16 = vadd.f32 %v543_v11, %v530_v12  ;;  %v696_v11 = vstv %s1063_s20  ;;  %v710_v12 = vstv %s1064_s11 }
 0x222   : > { %v571_v17 = vmul.f32 %v1309_v14, %v570_v8  ;;  %v1311_v18 = vpop.eup %1310  ;;  %1316 = vtanh.f32 %v623_v9 }
 0x223   : > { %v631_v20 = vpop.permute.xlu1 %630  ;;  %v558_v21 = vadd.f32 %v557_v15, %v544_v16  ;;  %v585_v32 = vmul.f32 %v1311_v18, %v584_v19  ;;  %v701_v48 = vpop.permute.xlu0 %700  ;;  %v728_v18 = vand.u32 127, %v507_v24 }
 0x224   : > { %v637_v22 = vadd.f32 %v636_v13, %v631_v20  ;;  %v707_v57 = vadd.f32 %v706_v44, %v701_v48  ;;  %v417_v48 = vld [vmem:[%s1943_s26 + $0x58] sm:$0xff] }
 0x225   : > { %v572_v30 = vadd.f32 %v571_v17, %v558_v21  ;;  %v724_v17 = vstv %s1065_s5  ;;  %vm729_vm3 = vcmp.lt.s32.totalorder %v728_v18, 8 }
 0x226   : > { %v1313_v29 = vpop.eup %1312  ;;  %1318 = vtanh.f32 %v637_v22 }
 0x227   : > { %v586_v34 = vadd.f32 %v585_v32, %v572_v30  ;;  %v599_v35 = vmul.f32 %v1313_v29, %v598_v23  ;;  %v408_v29 = vld [vmem:[%s1943_s26 + $0x10] sm:$0xff]  ;;  %v409_v32 = vld [vmem:[%s1943_s26 + $0x18] sm:$0xff] }
 0x228   : > { %v645_v36 = vpop.permute.xlu1 %644  ;;  %v1144_v24 = vpack.c.bf16 %v409_v32, %v408_v29 }
 0x229   : > { %v651_v41 = vadd.f32 %v650_v27, %v645_v36  ;;  %v600_v28 = vadd.f32 %v599_v35, %v586_v34  ;;  %v407_v27 = vld [vmem:[%s1943_s26 + $0x8] sm:$0xff]  ;;  %v412_v36 = vld [vmem:[%s1943_s26 + $0x30] sm:$0xff] }
 0x22a   : > { %v1141_v30 = vpack.c.bf16 %v407_v27, %v406_v26  ;;  %v411_v34 = vld [vmem:[%s1943_s26 + $0x28] sm:$0xff] }
 0x22b   : > { %v1315_v42 = vpop.eup %1314  ;;  %1320 = vtanh.f32 %v651_v41  ;;  %v1147_v35 = vpack.c.bf16 %v411_v34, %v410_v33  ;;  %v414_v41 = vld [vmem:[%s1943_s26 + $0x40] sm:$0xff] }
 0x22c   : > { %v613_v43 = vmul.f32 %v1315_v42, %v612_v37  ;;  %v1317_v45 = vpop.eup %1316  ;;  %1322 = vtanh.f32 %v665_v40  ;;  %1142 = vmatpush3.bf16.msra.mxu1 %v1141_v30  ;;  %v413_v37 = vld [vmem:[%s1943_s26 + $0x38] sm:$0xff] }
 0x22d   : > { %v673_v49 = vpop.permute.xlu1 %672  ;;  %v627_v56 = vmul.f32 %v1317_v45, %v626_v46  ;;  %1143 = vmatprep.subr.bf16.mxu1 %v1602_v2  ;;  %v1150_v40 = vpack.c.bf16 %v413_v37, %v412_v36  ;;  %v416_v46 = vld [vmem:[%s1943_s26 + $0x50] sm:$0xff] }
 0x22e   : > { %v614_v50 = vadd.f32 %v613_v43, %v600_v28  ;;  %v679_v51 = vadd.f32 %v678_v31, %v673_v49  ;;  %v415_v31 = vld [vmem:[%s1943_s26 + $0x48] sm:$0xff]  ;;  %v418_v49 = vld [vmem:[%s1943_s26 + $0x60] sm:$0xff] }
 0x22f   : > { %v1153_v42 = vpack.c.bf16 %v415_v31, %v414_v41 }
 0x230   : > { %v1319_v55 = vpop.eup %1318  ;;  %1324 = vtanh.f32 %v679_v51  ;;  %v628_v47 = vadd.f32 %v627_v56, %v614_v50  ;;  %1145 = vmatpush3.bf16.msra.mxu1 %v1144_v24  ;;  %v1156_v50 = vpack.c.bf16 %v417_v48, %v416_v46  ;;  %v419_v51 = vld [vmem:[%s1943_s26 + $0x68] sm:$0xff] }
 0x231   : > { %v641_v58 = vmul.f32 %v1319_v55, %v640_v38  ;;  %1326 = vtanh.f32 %v707_v57  ;;  %1146 = vmatprep.subr.bf16.mxu1 %v1602_v2  ;;  %v1159_v38 = vpack.c.bf16 %v419_v51, %v418_v49  ;;  %v421_v55 = vld [vmem:[%s1943_s26 + $0x78] sm:$0xff] }
 0x232   : > { %v687_v59 = vpop.permute.xlu1 %686 }
 0x233   : > { %v693_v61 = vadd.f32 %v692_v52, %v687_v59  ;;  %v642_v0 = vadd.f32 %v641_v58, %v628_v47  ;;  %v420_v52 = vld [vmem:[%s1943_s26 + $0x70] sm:$0xff]  ;;  %s2056_s26 = scalar_lea.hbm %s2137_s6, %s1068_s13 }
 0x234   : > { %1148 = vmatpush3.bf16.msra.mxu1 %v1147_v35  ;;  %v1162_v56 = vpack.c.bf16 %v421_v55, %v420_v52 }
 0x235   : > { %v1321_v63 = vpop.eup %1320  ;;  %1328 = vtanh.f32 %v693_v61  ;;  %1149 = vmatprep.subr.bf16.mxu1 %v1602_v2 }
 0x236   : > { %v655_v39 = vmul.f32 %v1321_v63, %v654_v60  ;;  %v1323_v1 = vpop.eup %1322 }
 0x237   : > { %v715_v4 = vpop.permute.xlu1 %714  ;;  %v669_v9 = vmul.f32 %v1323_v1, %v668_v3 }
 0x238   : > { %v721_v5 = vadd.f32 %v720_v62, %v715_v4  ;;  %v656_v6 = vadd.f32 %v655_v39, %v642_v0  ;;  %1151 = vmatpush3.bf16.msra.mxu1 %v1150_v40 }
 0x239   : > { %1152 = vmatprep.subr.bf16.mxu1 %v1602_v2 }
 0x23a   : > { %v1325_v8 = vpop.eup %1324  ;;  %1330 = vtanh.f32 %v721_v5  ;;  %v670_v10 = vadd.f32 %v669_v9, %v656_v6 }
 0x23b   : > { %v683_v25 = vmul.f32 %v1325_v8, %v682_v7  ;;  %v1327_v53 = vpop.eup %1326 }
 0x23c   : > { %v711_v16 = vmul.f32 %v1327_v53, %v710_v12  ;;  %1154 = vmatpush3.bf16.msra.mxu1 %v1153_v42 }
 0x23d   : > { %v684_v13 = vadd.f32 %v683_v25, %v670_v10  ;;  %1155 = vmatprep.subr.bf16.mxu1 %v1602_v2 }
 0x23f   : > { %v1329_v54 = vpop.eup %1328 }
 0x240   : > { %v697_v14 = vmul.f32 %v1329_v54, %v696_v11  ;;  %1157 = vmatpush3.bf16.msra.mxu1 %v1156_v50 }
 0x241   : > { %1158 = vmatprep.subr.bf16.mxu1 %v1602_v2 }
 0x242   : > { %v698_v15 = vadd.f32 %v697_v14, %v684_v13 }
 0x244   : > { %v1331_v19 = vpop.eup %1330  ;;  %v712_v20 = vadd.f32 %v711_v16, %v698_v15  ;;  %1160 = vmatpush3.bf16.msra.mxu1 %v1159_v38 }
 0x245   : > { %v725_v21 = vmul.f32 %v1331_v19, %v724_v17  ;;  %1161 = vmatprep.subr.bf16.mxu1 %v1602_v2 }
 0x247   : > { %v726_v22 = vadd.f32 %v725_v21, %v712_v20 }
 0x248   : > { %1163 = vmatpush3.bf16.msra.mxu1 %v1162_v56 }
 0x249   : > { %v730_v23 = vsel %vm729_vm3, %v726_v22, -1e+30 }
 0x24a   : > { %731 = vmax.xlane.f32.xlu1 %v730_v23 }
 0x2d7   : > { %v732_v28 = vpop.xlane.xlu1 %731 }
 0x2d8   : > { %v733_v43 = vsub.f32 %v730_v23, %v732_v28 }
 0x2da   : > { %v734_v44 = vmul.f32 1.442695, %v733_v43 }
 0x2dc   : > { %1332 = vpow2.f32 %v734_v44 }
 0x2e6   : > { %v1333_v45 = vpop.eup %1332 }
 0x2e7   : > { %736 = vadd.xlane.f32.xlu0 %v1333_v45 }
 0x374   : > { %v737_v57 = vpop.xlane.xlu0 %736 }
 0x375   : > { %1334 = vrcp.f32 %v737_v57 }
 0x37f   : > { %v1335_v47 = vpop.eup %1334 }
 0x380   : > { %v739_v58 = vmul.f32 %v1335_v47, %v1333_v45 }
 0x382   : > { %1134 = vmatmul.mubr.f32.vlgmr.msra.gmra.mrb[0].mxu1 %v739_v58  ;;  %811 = vst [vmem:[%s400_s29] sm:$0xff] %v739_v58 }
 0x383   : > { %1480 = shalt.err (!%p1477_p13)
}
 0x384   : > { %s1481_s23 = scalar_lea.hbm %s2056_s26, 128  ;;  %s1485_s16 = scalar_lea.hbm %s2137_s6, 256 }
 0x385   : > { %p1482_p9 = scmp.ne.s32.totalorder %s2056_s26, %s1481_s23  ;;  %p1486_p1 = scmp.lt.u32.totalorder %s2056_s26, %s2137_s6 }
 0x386   : > { %p1487_p2 = scmp.lt.u32.totalorder %s1485_s16, %s1481_s23  ;;  %p1489_p4 = scmp.lt.u32.totalorder %s1481_s23, %s2056_s26 }
 0x387   : > { %p1483_p5 = pnand %p1482_p9, %p2180_p3 }
 0x388   : > { %p1488_p7 = por %p1487_p2, %p1486_p1 }
 0x389   : > { %p1484_p11 = pneg %p1483_p5 }
 0x38a   : > { %p1490_p8 = por %p1489_p4, %p1488_p7 }
 0x38c   : > { %p1491_p12 = pnand %p1490_p8, %p1484_p11 }
 0x38e   : > { %1494 = shalt.err (!%p1491_p12)
}
 0x38f   : > { %1179 = dma.vmem_to_hbm [thread:$0]  (%p2180_p3), %s847_s12, 128, %s2056_s26, %s818_s19  }
 0x390   : > { %s393_s20 = scalar_lea.vmem [#allocation12], %s1938_s27  ;;  %s2181_s15 = sld [smem:[#allocation28_spill]] }
 0x391   : > { %s832_s11 = sshll.u32 %s393_s20, 4  ;;  %s813_s2 = scalar_lea.sflag [#allocation4], %s1928_s17  ;;  %s2077_s11 = int_to_ptr.vmem [resolvable:$true] %s832_s11 }
 0x392   : > { %s1495_s18 = scalar_lea.vmem %s2077_s11, 128  ;;  %s1622_s27 = smov [#allocation12]  }
 0x393   : > { %p1496_p6 = scmp.ne.s32.totalorder %s2077_s11, %s1495_s18  ;;  %s1499_s26 = sshll.u32 %s1622_s27, 4  ;;  %s1500_s26 = int_to_ptr.vmem [resolvable:$false] %s1499_s26 }
 0x394   : > { %s1501_s24 = scalar_lea.vmem %s1500_s26, 256  ;;  %p1502_p13 = scmp.lt.s32.totalorder %s2077_s11, %s1500_s26 }
 0x395   : > { %p1497_p0 = pnand %p1496_p6, %p2180_p3  ;;  %p1503_p9 = scmp.lt.s32.totalorder %s1501_s24, %s1495_s18 }
 0x396   : > { %s2084_s10 = scalar_lea.hbm %s2181_s15, %s1068_s13 }
 0x397   : > { %p1498_p10 = pneg %p1497_p0  ;;  %p1504_p5 = por %p1503_p9, %p1502_p13 }
 0x399   : > { %p1505_p11 = pnand %p1504_p5, %p1498_p10 }
 0x455   : > { %v806_v2 = vpop.f32.mrb[0].mxu1 }
 0x456   : > { %810 = vst [vmem:[%s393_s20] sm:$0xff] %v806_v2  ;;  %v1135_v59 = vpop.f32.mrb[1].mxu1 }
 0x457   : > { %1508 = shalt.err (!%p1505_p11)
}
 0x458   : > { %s1509_s17 = scalar_lea.hbm %s2084_s10, 128  ;;  %s1513_s19 = scalar_lea.hbm %s2181_s15, 256 }
 0x459   : > { %p1510_p1 = scmp.ne.s32.totalorder %s2084_s10, %s1509_s17  ;;  %p1514_p4 = scmp.lt.u32.totalorder %s2084_s10, %s2181_s15 }
 0x45a   : > { %p1515_p8 = scmp.lt.u32.totalorder %s1513_s19, %s1509_s17  ;;  %p1517_p6 = scmp.lt.u32.totalorder %s1509_s17, %s2084_s10 }
 0x45b   : > { %p1511_p2 = pnand %p1510_p1, %p2180_p3 }
 0x45c   : > { %p1516_p12 = por %p1515_p8, %p1514_p4 }
 0x45d   : > { %p1512_p7 = pneg %p1511_p2 }
 0x45e   : > { %p1518_p0 = por %p1517_p6, %p1516_p12 }
 0x460   : > { %p1519_p10 = pnand %p1518_p0, %p1512_p7 }
 0x462   : > { %1522 = shalt.err (!%p1519_p10)
}
 0x463   : > { %1178 = dma.vmem_to_hbm [thread:$0]  (%p2180_p3), %s2077_s11, 128, %s2084_s10, %s813_s2  }
 0x464 PF: > { %s2182_s23 = sld [smem:[#allocation21_spill]]  ;;  %s2183_s9 = sld [smem:[#allocation26_spill]] }
 0x465   : > { %s2184_s21 = sld [smem:[#allocation23_spill]] }
 0x46a   : > { %s858_s16 = sand.u32 1, %s2182_s23   ;;  %p2185_p13 = scmp.ne.s32.totalorder %s2183_s9, 0 }
 0x46b   : > { %p2186_p9 = scmp.ge.s32.totalorder %s2184_s21, 2  ;;  %s859_s30 = scalar_lea.sflag [#allocation4], %s858_s16 }
 0x46d   : > { %p1200_p5 = pnand %p2186_p9, %p2185_p13 }
 0x46f   : > { %1564 = dma.done.wait (!%p1200_p5), %s859_s30, 128  }
 0x470   : > { %1566 = vsyncadd (!%p1200_p5), %s859_s30, 4294967168  ;;  %s868_s8 = scalar_lea.sflag [#allocation14], %s858_s16 }
 0x471   : > { %1568 = dma.done.wait (!%p1200_p5), %s868_s8, 128  }
 0x472   : > { %1570 = vsyncadd (!%p1200_p5), %s868_s8, 4294967168  ;;  %s31_s26 = sadd.s32 1, %s2184_s21   ;;  %s2187_s14 = sld [smem:[#allocation22_spill]] }
 0x473   : > { %p28_p11 = scmp.ge.s32.totalorder %s31_s26, 4   ;;  %s2188_s23 = sld [smem:[#allocation25_spill]] }
 0x474   : > { %s2189_s20 = sld [smem:[#allocation24_spill]]  ;;  %s2190_s21 = smov %s1577_s22 }
 0x475   : > { %s2192_s24 = smov %s1589_s25  ;;  %30 = sbr.rel (!%p28_p11) target bundleno = 15 (0xf), region = 136 }
 0x478   : > { %s2191_s22 = smov %s2187_s14 }
 0x47a   : > { %s2193_s25 = smov %s2189_s20 }
 0x47c   :  { %873 = vsyncpa [#allocation3], 1 }
 0x47d   :  { %875 = vsyncpa [#allocation3 + $0x1], 1 }
 0x47e   :  { %876 = vsyncpa [#allocation8], 1 }
 0x47f   :  { %878 = vsyncpa [#allocation8 + $0x1], 1 }
 0x480   :  { %879 = vsyncpa [#allocation11], 1 }
 0x481   :  { %881 = vsyncpa [#allocation11 + $0x1], 1 }
 0x482   :  { %882 = vsyncpa [#allocation4], 1 }
 0x483   :  { %884 = vsyncpa [#allocation4 + $0x1], 1 }
 0x484   :  { %885 = vsyncpa [#allocation14], 1 }
 0x485   :  { %887 = vsyncpa [#allocation14 + $0x1], 1 }
 0x486   :  { %888 = vsyncpa [#allocation5], 1 }
 0x487   :  { %890 = vsyncpa [#allocation5 + $0x1], 1 }

</bundles_post_ra>
